<compile_context>
chip_gen: v7x
topology: tpu7x:2x2x1
jax: 0.10.0
libtpu: 0.0.40
codegen_flags: <defaults>
</compile_context>

<pallas_src>
import functools

import jax
import jax.numpy as jnp
from jax.experimental import pallas as pl
from jax.experimental.pallas import tpu as pltpu

D_IN, D_HID, D_OUT = 600, 128, 100
D_OUT_PAD = 128                      # lane-aligned output width


def _round_up(n: int, m: int) -> int:
    return ((n + m - 1) // m) * m


def mlp_kernel(x_ref, w1_ref, b1_ref, w2_ref, b2_ref, o_ref):
    # x_ref : (TB, 600) f32      w1_ref: (600, 128) f32   b1_ref: (1, 128) f32
    # w2_ref: (128, 128) f32     b2_ref: (1, 128) f32     o_ref : (TB, 128) f32
    h = jnp.dot(x_ref[...], w1_ref[...], preferred_element_type=jnp.float32)
    h = jnp.tanh(h + b1_ref[...])                     # bias + tanh (VPU + EUP)
    y = jnp.dot(h, w2_ref[...], preferred_element_type=jnp.float32)
    o_ref[...] = (y + b2_ref[...]).astype(o_ref.dtype)  # lane-dense 128-wide store


def prepare_params(w1, b1, w2, b2):
    """One-time: pad the output dim to 128 lanes.

    Weights follow (in_features, out_features) layout, i.e. torch weight.T.
    """
    w1_p = w1.astype(jnp.float32).reshape(D_IN, D_HID)
    b1_p = b1.astype(jnp.float32).reshape(1, D_HID)
    w2_p = (jnp.zeros((D_HID, D_OUT_PAD), jnp.float32)
            .at[:, :D_OUT].set(w2.astype(jnp.float32).reshape(D_HID, D_OUT)))
    b2_p = (jnp.zeros((1, D_OUT_PAD), jnp.float32)
            .at[:, :D_OUT].set(b2.astype(jnp.float32).reshape(1, D_OUT)))
    return w1_p, b1_p, w2_p, b2_p


@functools.partial(jax.jit, static_argnames=("tb",))
def mlp_forward(x, w1_p, b1_p, w2_p, b2_p, *, tb=512):
    """x: (B, 600) f32 -> (B, 100) f32."""
    B = x.shape[0]
    # Large batch tile fills the MXU and amortizes per-grid-step overhead;
    # shrink (multiple of 8 sublanes) for small batches.
    tb_eff = min(tb, _round_up(B, 8))
    grid = (pl.cdiv(B, tb_eff),)

    out = pl.pallas_call(
        mlp_kernel,
        out_shape=jax.ShapeDtypeStruct((B, D_OUT_PAD), jnp.float32),
        grid_spec=pltpu.PrefetchScalarGridSpec(
            num_scalar_prefetch=0,
            grid=grid,
            in_specs=[
                pl.BlockSpec((tb_eff, D_IN), lambda i: (i, 0)),    # x tile (K=600 full dim)
                pl.BlockSpec((D_IN, D_HID), lambda i: (0, 0)),     # W1 (VMEM-resident)
                pl.BlockSpec((1, D_HID), lambda i: (0, 0)),        # b1
                pl.BlockSpec((D_HID, D_OUT_PAD), lambda i: (0, 0)),  # W2 (VMEM-resident)
                pl.BlockSpec((1, D_OUT_PAD), lambda i: (0, 0)),    # b2
            ],
            out_specs=pl.BlockSpec((tb_eff, D_OUT_PAD), lambda i: (i, 0)),
        ),
        compiler_params=pltpu.CompilerParams(
            dimension_semantics=("parallel",),   # shard batch steps across TCs (v7x)
        ),
    )(x, w1_p, b1_p, w2_p, b2_p)
    return out[:, :D_OUT]


def init_params(key):
    """Deterministic init mimicking nn.Linear's U(-1/sqrt(fan_in), 1/sqrt(fan_in)).

    Weights stored as (in, out) == torch weight (out, in) transposed.
    """
    k1, k2, k3, k4 = jax.random.split(key, 4)
    lim1 = 1.0 / jnp.sqrt(jnp.float32(D_IN))
    lim2 = 1.0 / jnp.sqrt(jnp.float32(D_HID))
    w1 = jax.random.uniform(k1, (D_IN, D_HID), jnp.float32, -lim1, lim1)
    b1 = jax.random.uniform(k2, (1, D_HID), jnp.float32, -lim1, lim1)
    w2 = jax.random.uniform(k3, (D_HID, D_OUT), jnp.float32, -lim2, lim2)
    b2 = jax.random.uniform(k4, (1, D_OUT), jnp.float32, -lim2, lim2)
    return w1, b1, w2, b2


def mlp_ref(x, w1, b1, w2, b2):
    return jnp.tanh(x @ w1 + b1) @ w2 + b2


if __name__ == "__main__":
    key = jax.random.PRNGKey(0)
    kx, kp = jax.random.split(key)
    B = 32
    x = jax.random.normal(kx, (B, D_IN), jnp.float32)
    w1, b1, w2, b2 = init_params(kp)
    w1_p, b1_p, w2_p, b2_p = prepare_params(w1, b1, w2, b2)

    out = jax.block_until_ready(mlp_forward(x, w1_p, b1_p, w2_p, b2_p))

    ref = mlp_ref(x, w1, b1, w2, b2)          # f32 reference
    assert out.shape == (B, D_OUT)
    max_err = float(jnp.max(jnp.abs(out - ref)))
    assert max_err < 2e-2, f"max err {max_err}"
    print("KERNEL_OK")
</pallas_src>

<mosaic_0001>
module attributes {stable_mosaic.version = 11 : i64} {
  func.func @mlp_kernel(%arg0: i32, %arg1: memref<32x600xf32, #tpu.memory_space<vmem>>, %arg2: memref<600x128xf32, #tpu.memory_space<vmem>>, %arg3: memref<1x128xf32, #tpu.memory_space<vmem>>, %arg4: memref<128x128xf32, #tpu.memory_space<vmem>>, %arg5: memref<1x128xf32, #tpu.memory_space<vmem>>, %arg6: memref<32x128xf32, #tpu.memory_space<vmem>>) attributes {dimension_semantics = [#tpu.dimension_semantics<parallel>], iteration_bounds = array<i64: 1>, scalar_prefetch = 0 : i64, scratch_operands = 0 : i64, tpu.core_type = #tpu.core_type<tc>, window_params = [{transform_indices = @transform_0, window_bounds = array<i64: 32, 600>}, {pipeline_mode = #tpu.pipeline_mode<synchronous>, transform_indices = @transform_1, window_bounds = array<i64: 600, 128>}, {pipeline_mode = #tpu.pipeline_mode<synchronous>, transform_indices = @transform_2, window_bounds = array<i64: 1, 128>}, {pipeline_mode = #tpu.pipeline_mode<synchronous>, transform_indices = @transform_3, window_bounds = array<i64: 128, 128>}, {pipeline_mode = #tpu.pipeline_mode<synchronous>, transform_indices = @transform_4, window_bounds = array<i64: 1, 128>}, {transform_indices = @transform_5, window_bounds = array<i64: 32, 128>}]} {
    %c0 = arith.constant 0 : index
    %c0_0 = arith.constant 0 : index
    %0 = vector.load %arg1[%c0, %c0_0] : memref<32x600xf32, #tpu.memory_space<vmem>>, vector<32x600xf32>
    %c0_1 = arith.constant 0 : index
    %c0_2 = arith.constant 0 : index
    %1 = vector.load %arg2[%c0_1, %c0_2] : memref<600x128xf32, #tpu.memory_space<vmem>>, vector<600x128xf32>
    %cst = arith.constant dense<0.000000e+00> : vector<32x128xf32>
    %2 = tpu.matmul %0, %1, %cst {dimension_numbers = #tpu.dot_dimension_numbers<[1], [0], [0], [1], [0, 0, 1, 1], [], []>} : vector<32x600xf32>, vector<600x128xf32>, vector<32x128xf32> -> vector<32x128xf32>
    %c0_3 = arith.constant 0 : index
    %c0_4 = arith.constant 0 : index
    %3 = vector.load %arg3[%c0_3, %c0_4] : memref<1x128xf32, #tpu.memory_space<vmem>>, vector<1x128xf32>
    %4 = vector.broadcast %3 : vector<1x128xf32> to vector<32x128xf32>
    %5 = arith.addf %2, %4 : vector<32x128xf32>
    %6 = math.tanh %5 : vector<32x128xf32>
    %c0_5 = arith.constant 0 : index
    %c0_6 = arith.constant 0 : index
    %7 = vector.load %arg4[%c0_5, %c0_6] : memref<128x128xf32, #tpu.memory_space<vmem>>, vector<128x128xf32>
    %cst_7 = arith.constant dense<0.000000e+00> : vector<32x128xf32>
    %8 = tpu.matmul %6, %7, %cst_7 {dimension_numbers = #tpu.dot_dimension_numbers<[1], [0], [0], [1], [0, 0, 1, 1], [], []>} : vector<32x128xf32>, vector<128x128xf32>, vector<32x128xf32> -> vector<32x128xf32>
    %c0_8 = arith.constant 0 : index
    %c0_9 = arith.constant 0 : index
    %9 = vector.load %arg5[%c0_8, %c0_9] : memref<1x128xf32, #tpu.memory_space<vmem>>, vector<1x128xf32>
    %10 = vector.broadcast %9 : vector<1x128xf32> to vector<32x128xf32>
    %11 = arith.addf %8, %10 : vector<32x128xf32>
    %c0_10 = arith.constant 0 : index
    %c0_11 = arith.constant 0 : index
    %12 = vector.load %arg6[%c0_10, %c0_11] : memref<32x128xf32, #tpu.memory_space<vmem>>, vector<32x128xf32>
    tpu.vector_store %arg6[%c0_10, %c0_11], %11 {strides = array<i32>} : memref<32x128xf32, #tpu.memory_space<vmem>>, vector<32x128xf32>,
    return
  }
  func.func @transform_0(%arg0: i32) -> (i32, i32) {
    %c0_i32 = arith.constant 0 : i32
    %c0_i32_0 = arith.constant 0 : i32
    return %arg0, %c0_i32 : i32, i32
  }
  func.func @transform_1(%arg0: i32) -> (i32, i32) {
    %c0_i32 = arith.constant 0 : i32
    %c0_i32_0 = arith.constant 0 : i32
    %c0_i32_1 = arith.constant 0 : i32
    return %c0_i32, %c0_i32_0 : i32, i32
  }
  func.func @transform_2(%arg0: i32) -> (i32, i32) {
    %c0_i32 = arith.constant 0 : i32
    %c0_i32_0 = arith.constant 0 : i32
    %c0_i32_1 = arith.constant 0 : i32
    return %c0_i32, %c0_i32_0 : i32, i32
  }
  func.func @transform_3(%arg0: i32) -> (i32, i32) {
    %c0_i32 = arith.constant 0 : i32
    %c0_i32_0 = arith.constant 0 : i32
    %c0_i32_1 = arith.constant 0 : i32
    return %c0_i32, %c0_i32_0 : i32, i32
  }
  func.func @transform_4(%arg0: i32) -> (i32, i32) {
    %c0_i32 = arith.constant 0 : i32
    %c0_i32_0 = arith.constant 0 : i32
    %c0_i32_1 = arith.constant 0 : i32
    return %c0_i32, %c0_i32_0 : i32, i32
  }
  func.func @transform_5(%arg0: i32) -> (i32, i32) {
    %c0_i32 = arith.constant 0 : i32
    %c0_i32_0 = arith.constant 0 : i32
    return %arg0, %c0_i32 : i32, i32
  }
}

</mosaic_0001>

<bundles_post_ra>
// kernel: mlp_forward.1
= control target key start
LH: loop header
LB: loop body
LE: loop exit
PB: predicated region body
PF: predicated region fallthrough
CT: control target
= control target key end

     0   :  { %10 = vsyncpa [#allocation3], 0  ;;  %s1088_s0 = inlined_call_operand.hbm [shape: f32[32,600], index: 0, kind: input, shape index: {}]   ;;  %s1089_s1 = inlined_call_operand.hbm [shape: f32[600,128], index: 1, kind: input, shape index: {}]   ;;  %s1090_s2 = inlined_call_operand.vmem [shape: f32[1,128], index: 2, kind: input, shape index: {}]   ;;  %s1091_s3 = inlined_call_operand.hbm [shape: f32[128,128], index: 3, kind: input, shape index: {}]   ;;  %s1092_s4 = inlined_call_operand.vmem [shape: f32[1,128], index: 4, kind: input, shape index: {}]   ;;  %s1093_s5 = inlined_call_operand.hbm [shape: f32[32,128], index: 5, kind: output, shape index: {}]  }
   0x1   :  { %11 = vsyncpa [#allocation6], 0 }
   0x2   :  { %12 = vsyncpa [#allocation4], 0  ;;  %s987_s18 = smov [#allocation5]   ;;  %s893_s22 = scalar_lea.hbm %s1089_s1, 9600 }
   0x3   :  { %s30_s19 = sshll.u32 %s987_s18, 4  ;;  %p894_p0 = scmp.ne.s32.totalorder %s1089_s1, %s893_s22  ;;  %s31_s19 = int_to_ptr.vmem [resolvable:$true] %s30_s19 }
   0x4   :  { %p897_p1 = scmp.lt.u32.totalorder %s893_s22, %s1089_s1 }
   0x6   :  { %p899_p2 = pnand %p897_p1, %p894_p0 }
   0x8   :  { %902 = shalt.err (!%p899_p2)
}
   0x9   :  { %s903_s27 = scalar_lea.vmem %s31_s19, 9600  ;;  %p908_p4 = scmp.lt.s32.totalorder %s31_s19, %s31_s19 }
   0xa   :  { %p904_p3 = scmp.ne.s32.totalorder %s31_s19, %s903_s27  ;;  %p909_p5 = scmp.lt.s32.totalorder %s903_s27, %s903_s27 }
   0xc   :  { %p910_p6 = por %p909_p5, %p908_p4 }
   0xe   :  { %p911_p7 = pnand %p910_p6, %p904_p3 }
  0x10   :  { %914 = shalt.err (!%p911_p7)
}
  0x11   :  { %s988_s28 = smov 128   ;;  %s989_s29 = smov 8  }
  0x12   :  { %36 = dma.hbm_to_vmem [thread:$0]  %s1089_s1, 9600, %s31_s19, [#allocation6], %s988_s28, %s988_s28, %s989_s29  }
  0x13   :  { %s990_s7 = smov [#allocation2]   ;;  %s915_s11 = scalar_lea.hbm %s1088_s0, 2560 }
  0x14   :  { %s18_s8 = sshll.u32 %s990_s7, 4  ;;  %p916_p8 = scmp.ne.s32.totalorder %s1088_s0, %s915_s11  ;;  %s19_s8 = int_to_ptr.vmem [resolvable:$true] %s18_s8 }
  0x15   :  { %p919_p9 = scmp.lt.u32.totalorder %s915_s11, %s1088_s0 }
  0x17   :  { %p921_p10 = pnand %p919_p9, %p916_p8 }
  0x19   :  { %924 = shalt.err (!%p921_p10)
}
  0x1a   :  { %s925_s16 = scalar_lea.vmem %s19_s8, 2560  ;;  %p930_p12 = scmp.lt.s32.totalorder %s19_s8, %s19_s8 }
  0x1b   :  { %p926_p11 = scmp.ne.s32.totalorder %s19_s8, %s925_s16  ;;  %p931_p13 = scmp.lt.s32.totalorder %s925_s16, %s925_s16 }
  0x1d   :  { %p932_p0 = por %p931_p13, %p930_p12 }
  0x1f   :  { %p933_p1 = pnand %p932_p0, %p926_p11 }
  0x21   :  { %936 = shalt.err (!%p933_p1)
}
  0x22   :  { %s991_s1 = smov 640   ;;  %s992_s17 = smov 40  }
  0x23   :  { %24 = dma.hbm_to_vmem [thread:$0]  %s1088_s0, 2560, %s19_s8, [#allocation3], %s991_s1, %s991_s1, %s992_s17  }
  0x24   :  { %s993_s20 = smov [#allocation7]   ;;  %s937_s24 = scalar_lea.hbm %s1091_s3, 2048 }
  0x25   :  { %s44_s21 = sshll.u32 %s993_s20, 4  ;;  %p938_p2 = scmp.ne.s32.totalorder %s1091_s3, %s937_s24  ;;  %s45_s21 = int_to_ptr.vmem [resolvable:$true] %s44_s21 }
  0x26   :  { %p941_p3 = scmp.lt.u32.totalorder %s937_s24, %s1091_s3 }
  0x28   :  { %p943_p4 = pnand %p941_p3, %p938_p2 }
  0x2a   :  { %946 = shalt.err (!%p943_p4)
}
  0x2b   :  { %s947_s6 = scalar_lea.vmem %s45_s21, 2048  ;;  %p952_p6 = scmp.lt.s32.totalorder %s45_s21, %s45_s21 }
  0x2c   :  { %p948_p5 = scmp.ne.s32.totalorder %s45_s21, %s947_s6  ;;  %p953_p7 = scmp.lt.s32.totalorder %s947_s6, %s947_s6 }
  0x2e   :  { %p954_p8 = por %p953_p7, %p952_p6 }
  0x30   :  { %p955_p9 = pnand %p954_p8, %p948_p5 }
  0x32   :  { %958 = shalt.err (!%p955_p9)
}
  0x33   :  { %50 = dma.hbm_to_vmem [thread:$0]  %s1091_s3, 2048, %s45_s21, [#allocation6], %s988_s28, %s988_s28, %s989_s29  }
  0x34   :  { %981 = dma.done.wait [#allocation3], 2560  }
  0x35   :  { %982 = vsyncadd [#allocation3], 4294964736 }
  0x36   :  { %983 = dma.done.wait [#allocation6], 11648  }
  0x37   :  { %984 = vsyncadd [#allocation6], 4294955648  ;;  %v98_v0 = vld [vmem:[#allocation5 + $0x80] sm:$0xff]  ;;  %v99_v1 = vld [vmem:[#allocation5 + $0x88] sm:$0xff]  ;;  %vm164_vm0 = vcmask 719872   ;;  %s994_s10 = smov [#allocation8]  }
  0x38   :  { %v82_v2 = vld [vmem:[#allocation5] sm:$0xff]  ;;  %v761_v3 = vpack.c.bf16 %v99_v1, %v98_v0  ;;  %v83_v4 = vld [vmem:[#allocation5 + $0x8] sm:$0xff]  ;;  %v100_v11 = vld [vmem:[#allocation5 + $0x90] sm:$0xff]  ;;  %s553_s11 = sshll.u32 %s994_s10, 4  ;;  %s554_s11 = int_to_ptr.vmem [resolvable:$true] %s553_s11 }
  0x39   :  { %v130_v5 = vld [vmem:[#allocation5 + $0x180] sm:$0xff]  ;;  %v131_v6 = vld [vmem:[#allocation5 + $0x188] sm:$0xff]  ;;  %v763_v7 = vpack.c.bf16 %v83_v4, %v82_v2  ;;  %v101_v13 = vld [vmem:[#allocation5 + $0x98] sm:$0xff]  ;;  %s959_s12 = scalar_lea.vmem %s554_s11, 512  ;;  %p964_p11 = scmp.lt.s32.totalorder %s554_s11, %s554_s11 }
  0x3a   :  { %v793_v8 = vpack.c.bf16 %v131_v6, %v130_v5  ;;  %v114_v9 = vld [vmem:[#allocation5 + $0x100] sm:$0xff]  ;;  %v115_v10 = vld [vmem:[#allocation5 + $0x108] sm:$0xff]  ;;  %762 = vmatprep.subr.bf16.mxu0 %v761_v3  ;;  %v84_v14 = vld [vmem:[#allocation5 + $0x10] sm:$0xff]  ;;  %v765_v16 = vpack.c.bf16 %v101_v13, %v100_v11  ;;  %p960_p10 = scmp.ne.s32.totalorder %s554_s11, %s959_s12  ;;  %p965_p12 = scmp.lt.s32.totalorder %s959_s12, %s959_s12 }
  0x3b   :  { %v795_v12 = vpack.c.bf16 %v115_v10, %v114_v9  ;;  %v85_v15 = vld [vmem:[#allocation5 + $0x18] sm:$0xff]  ;;  %764 = vmatpush3.bf16.msra.mxu0 %v763_v7  ;;  %v132_v18 = vld [vmem:[#allocation5 + $0x190] sm:$0xff]  ;;  %v102_v23 = vld [vmem:[#allocation5 + $0xa0] sm:$0xff] }
  0x3c   :  { %794 = vmatprep.subr.bf16.mxu1 %v793_v8  ;;  %v767_v17 = vpack.c.bf16 %v85_v15, %v84_v14  ;;  %v133_v19 = vld [vmem:[#allocation5 + $0x198] sm:$0xff]  ;;  %v116_v20 = vld [vmem:[#allocation5 + $0x110] sm:$0xff]  ;;  %v103_v24 = vld [vmem:[#allocation5 + $0xa8] sm:$0xff]  ;;  %766 = vmatprep.subr.bf16.mxu0 %v765_v16  ;;  %p966_p13 = por %p965_p12, %p964_p11 }
  0x3d   :  { %796 = vmatpush3.bf16.msra.mxu1 %v795_v12  ;;  %v797_v21 = vpack.c.bf16 %v133_v19, %v132_v18  ;;  %v117_v22 = vld [vmem:[#allocation5 + $0x118] sm:$0xff]  ;;  %v769_v26 = vpack.c.bf16 %v103_v24, %v102_v23  ;;  %v86_v27 = vld [vmem:[#allocation5 + $0x20] sm:$0xff]  ;;  %v87_v28 = vld [vmem:[#allocation5 + $0x28] sm:$0xff] }
  0x3e   :  { %v799_v25 = vpack.c.bf16 %v117_v22, %v116_v20  ;;  %v134_v29 = vld [vmem:[#allocation5 + $0x1a0] sm:$0xff]  ;;  %v135_v30 = vld [vmem:[#allocation5 + $0x1a8] sm:$0xff]  ;;  %v771_v33 = vpack.c.bf16 %v87_v28, %v86_v27  ;;  %v104_v35 = vld [vmem:[#allocation5 + $0xb0] sm:$0xff]  ;;  %p967_p0 = pnand %p966_p13, %p960_p10 }
  0x3f   :  { %798 = vmatprep.subr.bf16.mxu1 %v797_v21  ;;  %v118_v31 = vld [vmem:[#allocation5 + $0x120] sm:$0xff]  ;;  %v119_v32 = vld [vmem:[#allocation5 + $0x128] sm:$0xff]  ;;  %768 = vmatpush3.bf16.msra.mxu0 %v767_v17  ;;  %v801_v34 = vpack.c.bf16 %v135_v30, %v134_v29  ;;  %v105_v36 = vld [vmem:[#allocation5 + $0xb8] sm:$0xff] }
  0x40   :  { %v88_v37 = vld [vmem:[#allocation5 + $0x30] sm:$0xff]  ;;  %770 = vmatprep.subr.bf16.mxu0 %v769_v26  ;;  %v803_v38 = vpack.c.bf16 %v119_v32, %v118_v31  ;;  %v773_v39 = vpack.c.bf16 %v105_v36, %v104_v35  ;;  %v89_v40 = vld [vmem:[#allocation5 + $0x38] sm:$0xff]  ;;  %v106_v46 = vld [vmem:[#allocation5 + $0xc0] sm:$0xff] }
  0x41   :  { %800 = vmatpush3.bf16.msra.mxu1 %v799_v25  ;;  %v136_v41 = vld [vmem:[#allocation5 + $0x1b0] sm:$0xff]  ;;  %v137_v42 = vld [vmem:[#allocation5 + $0x1b8] sm:$0xff]  ;;  %v107_v47 = vld [vmem:[#allocation5 + $0xc8] sm:$0xff]  ;;  %v775_v48 = vpack.c.bf16 %v89_v40, %v88_v37 }
  0x42   :  { %802 = vmatprep.subr.bf16.mxu1 %v801_v34  ;;  %v805_v43 = vpack.c.bf16 %v137_v42, %v136_v41  ;;  %v120_v44 = vld [vmem:[#allocation5 + $0x130] sm:$0xff]  ;;  %v121_v45 = vld [vmem:[#allocation5 + $0x138] sm:$0xff]  ;;  %v138_v49 = vld [vmem:[#allocation5 + $0x1c0] sm:$0xff]  ;;  %v777_v52 = vpack.c.bf16 %v107_v47, %v106_v46 }
  0x43   :  { %772 = vmatpush3.bf16.msra.mxu0 %v771_v33  ;;  %v139_v50 = vld [vmem:[#allocation5 + $0x1c8] sm:$0xff]  ;;  %v807_v51 = vpack.c.bf16 %v121_v45, %v120_v44  ;;  %v90_v53 = vld [vmem:[#allocation5 + $0x40] sm:$0xff]  ;;  %v108_v58 = vld [vmem:[#allocation5 + $0xd0] sm:$0xff] }
  0x44   :  { %774 = vmatprep.subr.bf16.mxu0 %v773_v39  ;;  %v91_v54 = vld [vmem:[#allocation5 + $0x48] sm:$0xff]  ;;  %v122_v55 = vld [vmem:[#allocation5 + $0x140] sm:$0xff]  ;;  %v809_v56 = vpack.c.bf16 %v139_v50, %v138_v49  ;;  %v109_v59 = vld [vmem:[#allocation5 + $0xd8] sm:$0xff] }
  0x45   :  { %804 = vmatpush3.bf16.msra.mxu1 %v803_v38  ;;  %v123_v57 = vld [vmem:[#allocation5 + $0x148] sm:$0xff]  ;;  %v140_v60 = vld [vmem:[#allocation5 + $0x1d0] sm:$0xff]  ;;  %v141_v61 = vld [vmem:[#allocation5 + $0x1d8] sm:$0xff]  ;;  %v779_v62 = vpack.c.bf16 %v91_v54, %v90_v53  ;;  %v781_v0 = vpack.c.bf16 %v109_v59, %v108_v58 }
  0x46   :  { %806 = vmatprep.subr.bf16.mxu1 %v805_v43  ;;  %v811_v63 = vpack.c.bf16 %v123_v57, %v122_v55  ;;  %v92_v1 = vld [vmem:[#allocation5 + $0x50] sm:$0xff]  ;;  %v93_v2 = vld [vmem:[#allocation5 + $0x58] sm:$0xff]  ;;  %v813_v4 = vpack.c.bf16 %v141_v61, %v140_v60  ;;  %v110_v6 = vld [vmem:[#allocation5 + $0xe0] sm:$0xff] }
  0x47   :  { %776 = vmatpush3.bf16.msra.mxu0 %v775_v48  ;;  %v124_v3 = vld [vmem:[#allocation5 + $0x150] sm:$0xff]  ;;  %v125_v5 = vld [vmem:[#allocation5 + $0x158] sm:$0xff]  ;;  %v111_v7 = vld [vmem:[#allocation5 + $0xe8] sm:$0xff]  ;;  %v783_v10 = vpack.c.bf16 %v93_v2, %v92_v1 }
  0x48   :  { %778 = vmatprep.subr.bf16.mxu0 %v777_v52  ;;  %v142_v8 = vld [vmem:[#allocation5 + $0x1e0] sm:$0xff]  ;;  %v143_v9 = vld [vmem:[#allocation5 + $0x1e8] sm:$0xff]  ;;  %v815_v13 = vpack.c.bf16 %v125_v5, %v124_v3  ;;  %v785_v14 = vpack.c.bf16 %v111_v7, %v110_v6  ;;  %v112_v19 = vld [vmem:[#allocation5 + $0xf0] sm:$0xff] }
  0x49   :  { %808 = vmatpush3.bf16.msra.mxu1 %v807_v51  ;;  %v94_v11 = vld [vmem:[#allocation5 + $0x60] sm:$0xff]  ;;  %v63_v12 = vld [vmem:[#allocation2 + $0x8] sm:$0xff]  ;;  %v817_v18 = vpack.c.bf16 %v143_v9, %v142_v8  ;;  %v113_v20 = vld [vmem:[#allocation5 + $0xf8] sm:$0xff] }
  0x4a   :  { %810 = vmatprep.subr.bf16.mxu1 %v809_v56  ;;  %v95_v15 = vld [vmem:[#allocation5 + $0x68] sm:$0xff]  ;;  %v126_v16 = vld [vmem:[#allocation5 + $0x160] sm:$0xff]  ;;  %241 = vmatprep.mubr.f32.mxu0 %v63_v12  ;;  %v65_v21 = vld [vmem:[#allocation2 + $0x18] sm:$0xff]  ;;  %v789_v26 = vpack.c.bf16 %v113_v20, %v112_v19 }
  0x4b   :  { %780 = vmatpush3.bf16.msra.mxu0 %v779_v62  ;;  %v127_v17 = vld [vmem:[#allocation5 + $0x168] sm:$0xff]  ;;  %v144_v22 = vld [vmem:[#allocation5 + $0x1f0] sm:$0xff]  ;;  %v145_v23 = vld [vmem:[#allocation5 + $0x1f8] sm:$0xff]  ;;  %326 = vmatprep.mubr.f32.mxu1 %v65_v21  ;;  %v787_v24 = vpack.c.bf16 %v95_v15, %v94_v11 }
  0x4c   :  { %782 = vmatprep.subr.bf16.mxu0 %v781_v0  ;;  %v819_v25 = vpack.c.bf16 %v127_v17, %v126_v16  ;;  %v96_v27 = vld [vmem:[#allocation5 + $0x70] sm:$0xff]  ;;  %v97_v28 = vld [vmem:[#allocation5 + $0x78] sm:$0xff]  ;;  %v821_v30 = vpack.c.bf16 %v145_v23, %v144_v22  ;;  %v146_v32 = vld [vmem:[#allocation5 + $0x200] sm:$0xff] }
  0x4d   :  { %812 = vmatpush3.bf16.msra.mxu1 %v811_v63  ;;  %v128_v29 = vld [vmem:[#allocation5 + $0x170] sm:$0xff]  ;;  %v129_v31 = vld [vmem:[#allocation5 + $0x178] sm:$0xff]  ;;  %v147_v33 = vld [vmem:[#allocation5 + $0x208] sm:$0xff]  ;;  %v791_v34 = vpack.c.bf16 %v97_v28, %v96_v27 }
  0x4e   :  { %814 = vmatprep.subr.bf16.mxu1 %v813_v4  ;;  %v823_v35 = vpack.c.bf16 %v129_v31, %v128_v29  ;;  %v825_v36 = vpack.c.bf16 %v147_v33, %v146_v32  ;;  %v148_v37 = vld [vmem:[#allocation5 + $0x210] sm:$0xff]  ;;  %v149_v38 = vld [vmem:[#allocation5 + $0x218] sm:$0xff]  ;;  %v62_v39 = vld [vmem:[#allocation2] sm:$0xff] }
  0x4f   :  { %784 = vmatpush3.bf16.msra.mxu0 %v783_v10  ;;  %v64_v40 = vld [vmem:[#allocation2 + $0x10] sm:$0xff]  ;;  %v829_v41 = vpack.c.bf16 %v149_v38, %v148_v37  ;;  %v150_v42 = vld [vmem:[#allocation5 + $0x220] sm:$0xff]  ;;  %v151_v43 = vld [vmem:[#allocation5 + $0x228] sm:$0xff] }
  0x50   :  { %786 = vmatprep.subr.bf16.mxu0 %v785_v14  ;;  %v68_v44 = vld [vmem:[#allocation2 + $0x30] sm:$0xff]  ;;  %v70_v45 = vld [vmem:[#allocation2 + $0x40] sm:$0xff]  ;;  %v67_v46 = vld [vmem:[#allocation2 + $0x28] sm:$0xff]  ;;  %v833_v47 = vpack.c.bf16 %v151_v43, %v150_v42 }
  0x51   :  { %816 = vmatpush3.bf16.msra.mxu1 %v815_v13  ;;  %v69_v48 = vld [vmem:[#allocation2 + $0x38] sm:$0xff]  ;;  %v152_v49 = vld [vmem:[#allocation5 + $0x230] sm:$0xff]  ;;  %v75_v52 = vld [vmem:[#allocation2 + $0x68] sm:$0xff] }
  0x52   :  { %818 = vmatprep.subr.bf16.mxu1 %v817_v18  ;;  %v153_v50 = vld [vmem:[#allocation5 + $0x238] sm:$0xff]  ;;  %v72_v53 = vld [vmem:[#allocation2 + $0x50] sm:$0xff]  ;;  %v74_v55 = vld [vmem:[#allocation2 + $0x60] sm:$0xff] }
  0x53   :  { %788 = vmatpush3.bf16.msra.mxu0 %v787_v24  ;;  %v73_v51 = vld [vmem:[#allocation2 + $0x58] sm:$0xff]  ;;  %v837_v54 = vpack.c.bf16 %v153_v50, %v152_v49  ;;  %v154_v56 = vld [vmem:[#allocation5 + $0x240] sm:$0xff]  ;;  %v155_v57 = vld [vmem:[#allocation5 + $0x248] sm:$0xff] }
  0x54   :  { %790 = vmatprep.subr.bf16.mxu0 %v789_v26  ;;  %v78_v58 = vld [vmem:[#allocation2 + $0x80] sm:$0xff]  ;;  %v80_v59 = vld [vmem:[#allocation2 + $0x90] sm:$0xff]  ;;  %v77_v60 = vld [vmem:[#allocation2 + $0x78] sm:$0xff]  ;;  %v841_v61 = vpack.c.bf16 %v155_v57, %v154_v56 }
  0x55   :  { %820 = vmatpush3.bf16.msra.mxu1 %v819_v25  ;;  %v79_v62 = vld [vmem:[#allocation2 + $0x88] sm:$0xff]  ;;  %v66_v63 = vld [vmem:[#allocation2 + $0x20] sm:$0xff]  ;;  %v156_v0 = vld [vmem:[#allocation5 + $0x250] sm:$0xff] }
  0x56   :  { %822 = vmatprep.subr.bf16.mxu1 %v821_v30  ;;  %v71_v1 = vld [vmem:[#allocation2 + $0x48] sm:$0xff]  ;;  %v76_v2 = vld [vmem:[#allocation2 + $0x70] sm:$0xff]  ;;  %v81_v3 = vld [vmem:[#allocation2 + $0x98] sm:$0xff] }
  0x57   :  { %792 = vmatpush3.bf16.msra.mxu0 %v791_v34  ;;  %v436_v4 = vld [vmem:[#allocation7] sm:$0xff]  ;;  %v437_v5 = vld [vmem:[#allocation7 + $0x8] sm:$0xff]  ;;  %v438_v7 = vld [vmem:[#allocation7 + $0x10] sm:$0xff] }
  0x58   :  { %826 = vmatprep.subr.bf16.mxu0 %v825_v36  ;;  %v845_v6 = vpack.c.bf16 %v437_v5, %v436_v4  ;;  %v439_v8 = vld [vmem:[#allocation7 + $0x18] sm:$0xff]  ;;  %v440_v10 = vld [vmem:[#allocation7 + $0x20] sm:$0xff]  ;;  %v441_v11 = vld [vmem:[#allocation7 + $0x28] sm:$0xff] }
  0x59   :  { %824 = vmatpush3.bf16.msra.mxu1 %v823_v35  ;;  %v849_v9 = vpack.c.bf16 %v439_v8, %v438_v7  ;;  %v853_v12 = vpack.c.bf16 %v441_v11, %v440_v10  ;;  %v442_v13 = vld [vmem:[#allocation7 + $0x30] sm:$0xff]  ;;  %v443_v14 = vld [vmem:[#allocation7 + $0x38] sm:$0xff]  ;;  %v444_v16 = vld [vmem:[#allocation7 + $0x40] sm:$0xff] }
  0x5a   :  { %242 = vmatmul.mubr.f32.vlgmr.msra.gmra.mrb[0].mxu0 %v62_v39  ;;  %846 = vmatprep.subr.bf16.mxu1 %v845_v6  ;;  %v857_v15 = vpack.c.bf16 %v443_v14, %v442_v13  ;;  %v445_v17 = vld [vmem:[#allocation7 + $0x48] sm:$0xff]  ;;  %v446_v19 = vld [vmem:[#allocation7 + $0x50] sm:$0xff]  ;;  %v447_v20 = vld [vmem:[#allocation7 + $0x58] sm:$0xff] }
  0x5b   :  { %828 = vmatpush3.bf16.msra.mxu0 %v825_v36  ;;  %246 = vmatprep.mubr.f32.mxu0 %v68_v44  ;;  %v861_v18 = vpack.c.bf16 %v445_v17, %v444_v16  ;;  %v865_v21 = vpack.c.bf16 %v447_v20, %v446_v19  ;;  %v448_v22 = vld [vmem:[#allocation7 + $0x60] sm:$0xff]  ;;  %v449_v23 = vld [vmem:[#allocation7 + $0x68] sm:$0xff]  ;;  %v450_v25 = vld [vmem:[#allocation7 + $0x70] sm:$0xff] }
  0x5c   :  { %327 = vmatmul.mubr.f32.vlgmr.msra.gmra.mrb[0].mxu1 %v64_v40  ;;  %830 = vmatprep.subr.bf16.mxu0 %v829_v41  ;;  %v869_v24 = vpack.c.bf16 %v449_v23, %v448_v22  ;;  %v451_v26 = vld [vmem:[#allocation7 + $0x78] sm:$0xff]  ;;  %v566_v29 = vld [vmem:[%s1090_s2] ss:$0 sm:$0xff] }
  0x5d   :  { %331 = vmatprep.mubr.f32.mxu1 %v70_v45  ;;  %848 = vmatpush3.bf16.msra.mxu1 %v845_v6  ;;  %v873_v27 = vpack.c.bf16 %v451_v26, %v450_v25 }
  0x5e   :  { %247 = vmatmul.mubr.f32.gmra.mrb[2].mxu0 %v67_v46  ;;  %850 = vmatprep.subr.bf16.mxu1 %v849_v9 }
  0x5f   :  { %832 = vmatpush3.bf16.msra.mxu0 %v829_v41  ;;  %251 = vmatprep.mubr.f32.mxu0 %v73_v51 }
  0x60   :  { %332 = vmatmul.mubr.f32.gmra.mrb[2].mxu1 %v69_v48  ;;  %834 = vmatprep.subr.bf16.mxu0 %v833_v47 }
  0x61   :  { %336 = vmatprep.mubr.f32.mxu1 %v75_v52  ;;  %852 = vmatpush3.bf16.msra.mxu1 %v849_v9  ;;  %v571_v9 = vld [vmem:[%s1092_s4] ss:$0 sm:$0xff] }
  0x62   :  { %252 = vmatmul.mubr.f32.gmra.mrb[4].mxu0 %v72_v53  ;;  %854 = vmatprep.subr.bf16.mxu1 %v853_v12 }
  0x63   :  { %836 = vmatpush3.bf16.msra.mxu0 %v833_v47  ;;  %256 = vmatprep.mubr.f32.mxu0 %v78_v58 }
  0x64   :  { %337 = vmatmul.mubr.f32.gmra.mrb[4].mxu1 %v74_v55  ;;  %838 = vmatprep.subr.bf16.mxu0 %v837_v54 }
  0x65   :  { %341 = vmatprep.mubr.f32.mxu1 %v80_v59  ;;  %856 = vmatpush3.bf16.msra.mxu1 %v853_v12 }
  0x66   :  { %257 = vmatmul.mubr.f32.gmra.mrb[6].mxu0 %v77_v60  ;;  %858 = vmatprep.subr.bf16.mxu1 %v857_v15 }
  0x67   :  { %840 = vmatpush3.bf16.msra.mxu0 %v837_v54  ;;  %717 = vmatprep.mubr.msk.f32.mxu0 %vm164_vm0, %v66_v63 }
  0x68   :  { %342 = vmatmul.mubr.f32.gmra.mrb[6].mxu1 %v79_v62  ;;  %842 = vmatprep.subr.bf16.mxu0 %v841_v61 }
  0x69   :  { %860 = vmatpush3.bf16.msra.mxu1 %v857_v15 }
  0x6a   :  { %862 = vmatprep.subr.bf16.mxu1 %v861_v18 }
  0x6b   :  { %844 = vmatpush3.bf16.msra.mxu0 %v841_v61 }
  0x6c   :  { %715 = vmatprep.subr.mxu0 %v156_v0 }
  0x6d   :  { %864 = vmatpush3.bf16.msra.mxu1 %v861_v18 }
  0x6e   :  { %866 = vmatprep.subr.bf16.mxu1 %v865_v21 }
  0x6f   :  { %716 = vmatpush3.msra.mxu0 %v156_v0 }
  0x70   :  { %718 = vmatmul.mubr.msk.f32.vlgmr.msra.gmra.mrb[8].mxu0 %vm164_vm0, %v71_v1 }
  0x71   :  { %720 = vmatprep.mubr.msk.f32.mxu0 %vm164_vm0, %v76_v2  ;;  %868 = vmatpush3.bf16.msra.mxu1 %v865_v21 }
  0x72   :  { %870 = vmatprep.subr.bf16.mxu1 %v869_v24 }
  0x74   :  { %721 = vmatmul.mubr.msk.f32.gmra.mrb[10].mxu0 %vm164_vm0, %v81_v3 }
  0x75   :  { %872 = vmatpush3.bf16.msra.mxu1 %v869_v24 }
  0x76   :  { %874 = vmatprep.subr.bf16.mxu1 %v873_v27 }
  0x79   :  { %876 = vmatpush3.bf16.msra.mxu1 %v873_v27 }
 0x12d   :  { %v604_v28 = vpop.f32.mrb[0].mxu0 }
 0x12e   :  { %v605_v30 = vpop.f32.mrb[1].mxu0 }
 0x12f   :  { %v648_v31 = vpop.f32.mrb[0].mxu1  ;;  %v606_v32 = vadd.f32 %v605_v30, %v604_v28 }
 0x130   :  { %v649_v33 = vpop.f32.mrb[1].mxu1 }
 0x131   :  { %v650_v34 = vadd.f32 %v649_v33, %v648_v31  ;;  %v244_v35 = vadd.f32 %v606_v32, %v566_v29  ;;  %v607_v36 = vpop.f32.mrb[2].mxu0 }
 0x132   :  { %v608_v37 = vpop.f32.mrb[3].mxu0 }
 0x133   :  { %v651_v38 = vpop.f32.mrb[2].mxu1  ;;  %v609_v39 = vadd.f32 %v608_v37, %v607_v36  ;;  %v329_v41 = vadd.f32 %v650_v34, %v244_v35 }
 0x134   :  { %v652_v40 = vpop.f32.mrb[3].mxu1 }
 0x135   :  { %v653_v42 = vadd.f32 %v652_v40, %v651_v38  ;;  %v249_v43 = vadd.f32 %v609_v39, %v566_v29  ;;  %v610_v44 = vpop.f32.mrb[4].mxu0 }
 0x136   :  { %v611_v45 = vpop.f32.mrb[5].mxu0 }
 0x137   :  { %v654_v46 = vpop.f32.mrb[4].mxu1  ;;  %v612_v47 = vadd.f32 %v611_v45, %v610_v44  ;;  %v334_v49 = vadd.f32 %v653_v42, %v249_v43 }
 0x138   :  { %v655_v48 = vpop.f32.mrb[5].mxu1 }
 0x139   :  { %v656_v50 = vadd.f32 %v655_v48, %v654_v46  ;;  %v254_v51 = vadd.f32 %v612_v47, %v566_v29  ;;  %v613_v52 = vpop.f32.mrb[6].mxu0 }
 0x13a   :  { %v614_v53 = vpop.f32.mrb[7].mxu0 }
 0x13b   :  { %v657_v54 = vpop.f32.mrb[6].mxu1  ;;  %v615_v55 = vadd.f32 %v614_v53, %v613_v52  ;;  %v339_v57 = vadd.f32 %v656_v50, %v254_v51 }
 0x13c   :  { %v658_v56 = vpop.f32.mrb[7].mxu1 }
 0x13d   :  { %v659_v58 = vadd.f32 %v658_v56, %v657_v54  ;;  %v259_v59 = vadd.f32 %v615_v55, %v566_v29 }
 0x13f   :  { %v344_v60 = vadd.f32 %v659_v58, %v259_v59 }
 0x143   :  { %v719_v61 = vpop.f32.mrb[8].mxu0 }
 0x144   :  { %v419_v62 = vadd.f32 %v719_v61, %v334_v49  ;;  %v413_v63 = vpop.f32.mrb[9].mxu0 }
 0x145   :  { %v414_v0 = vadd.f32 %v413_v63, %v329_v41 }
 0x147   :  { %885 = vtanh.f32 %v414_v0  ;;  %v722_v1 = vpop.f32.mrb[10].mxu0 }
 0x148   :  { %887 = vtanh.f32 %v419_v62  ;;  %v429_v2 = vadd.f32 %v722_v1, %v344_v60  ;;  %v423_v3 = vpop.f32.mrb[11].mxu0 }
 0x149   :  { %v424_v4 = vadd.f32 %v423_v3, %v339_v57 }
 0x14b   :  { %889 = vtanh.f32 %v424_v4 }
 0x14c   :  { %891 = vtanh.f32 %v429_v2 }
 0x151   :  { %v886_v5 = vpop.eup %885 }
 0x152   :  { %v888_v6 = vpop.eup %887  ;;  %755 = vmatprep.mubr.f32.mxu1 %v886_v5 }
 0x153   :  { %756 = vmatmul.mubr.f32.vlgmr.msra.gmra.mrb[8].mxu1 %v888_v6 }
 0x155   :  { %v890_v7 = vpop.eup %889 }
 0x156   :  { %v892_v8 = vpop.eup %891  ;;  %758 = vmatprep.mubr.f32.mxu1 %v890_v7 }
 0x157   :  { %759 = vmatmul.mubr.f32.gmra.mrb[10].mxu1 %v892_v8 }
 0x226   :  { %v757_v10 = vpop.f32.mrb[8].mxu1 }
 0x227   :  { %v531_v11 = vadd.f32 %v757_v10, %v571_v9  ;;  %v525_v12 = vpop.f32.mrb[9].mxu1 }
 0x228   :  { %v526_v13 = vadd.f32 %v571_v9, %v525_v12 }
 0x229   :  { %545 = vst [vmem:[#allocation8 + $0x8] sm:$0xff] %v531_v11 }
 0x22a   :  { %544 = vst [vmem:[#allocation8] sm:$0xff] %v526_v13  ;;  %v760_v14 = vpop.f32.mrb[10].mxu1 }
 0x22b   :  { %v541_v15 = vadd.f32 %v760_v14, %v571_v9  ;;  %v535_v16 = vpop.f32.mrb[11].mxu1 }
 0x22c   :  { %v536_v17 = vadd.f32 %v571_v9, %v535_v16 }
 0x22d   :  { %547 = vst [vmem:[#allocation8 + $0x18] sm:$0xff] %v541_v15 }
 0x22e   :  { %546 = vst [vmem:[#allocation8 + $0x10] sm:$0xff] %v536_v17 }
 0x22f   :  { %970 = shalt.err (!%p967_p0)
}
 0x230   :  { %s971_s14 = scalar_lea.hbm %s1093_s5, 512 }
 0x231   :  { %p972_p1 = scmp.ne.s32.totalorder %s1093_s5, %s971_s14  ;;  %p975_p2 = scmp.lt.u32.totalorder %s971_s14, %s1093_s5 }
 0x233   :  { %p977_p3 = pnand %p975_p2, %p972_p1 }
 0x235   :  { %980 = shalt.err (!%p977_p3)
}
 0x236   :  { %559 = dma.vmem_to_hbm [thread:$0]  %s554_s11, 512, %s1093_s5, [#allocation4], %s988_s28, %s988_s28, %s989_s29  }
 0x237   :  { %985 = dma.done.wait [#allocation4], 512  }
 0x238   :  { %986 = vsyncadd [#allocation4], 4294966784 }
 0x239   :  { %563 = vsyncpa [#allocation3], 1 }
 0x23a   :  { %564 = vsyncpa [#allocation6], 1 }
 0x23b   :  { %565 = vsyncpa [#allocation4], 1 }

</bundles_post_ra>
